<compile_context>
chip_gen: v7x
topology: tpu7x:2x2x1
jax: 0.10.0
libtpu: 0.0.40
codegen_flags: <defaults>
</compile_context>

<pallas_src>
import jax
import jax.numpy as jnp
from jax.experimental import pallas as pl
from jax.experimental.pallas import tpu as pltpu


def _round_up(n, m):
    return ((n + m - 1) // m) * m


def _make_kernel(n_mlp_layers, num_fields, embed_dim):
    fe = num_fields * embed_dim

    def kernel(x_ref, *refs):
        # x_ref : (TB, F*E + 1) f32  = [flat embeddings | linear+biases column]
        # refs  : W1, b1, ..., WL, bL, w_out_row, out_ref
        out_ref = refs[-1]
        wo_ref = refs[-2]
        layer_refs = refs[:2 * n_mlp_layers]

        x = x_ref[...]                                   # (TB, FE+1) f32
        emb = x[:, :fe]                                  # (TB, FE)
        lin = x[:, fe]                                   # (TB,)  sum_f(w_f) + lin_bias + b_out

        # FactorizationMachine (reduce_sum=True):
        #   0.5 * [ sum_e (sum_f x)^2  -  sum_{f,e} x^2 ]
        sum_f = emb[:, 0:embed_dim]
        for f in range(1, num_fields):
            sum_f = sum_f + emb[:, f * embed_dim:(f + 1) * embed_dim]
        fm = 0.5 * (jnp.sum(sum_f * sum_f, axis=1) - jnp.sum(emb * emb, axis=1))  # (TB,)

        # DFA MLP (eval forward): [Linear+BN folded -> ReLU -> (Dropout/DFA = id)]*
        h = emb
        for l in range(n_mlp_layers):
            w_ref, b_ref = layer_refs[2 * l], layer_refs[2 * l + 1]
            h = jnp.dot(h.astype(jnp.bfloat16), w_ref[...],
                        preferred_element_type=jnp.float32)
            h = jnp.maximum(h + b_ref[...], 0.0)
        # output Linear(., 1): VPU multiply + lane reduce (its bias folded into `lin`)
        mlp = jnp.sum(h * wo_ref[...], axis=1)           # (TB,)

        out_ref[...] = jax.nn.sigmoid(lin + fm + mlp)[None, :]   # (1, TB) lane-dense

    return kernel


def init_params(key, field_dims, embed_dim, mlp_dims):
    n_feat = int(sum(field_dims))
    num_fields = len(field_dims)
    embed_out_dim = num_fields * embed_dim

    n_keys = 3 + 2 * len(mlp_dims) + 2
    keys = list(jax.random.split(key, n_keys))
    k = iter(keys)

    offs = [0]
    for d in field_dims[:-1]:
        offs.append(offs[-1] + int(d))

    params = {}
    params["offsets"] = jnp.asarray(offs, dtype=jnp.int32)
    params["emb_table"] = 0.1 * jax.random.normal(
        next(k), (n_feat, embed_dim), dtype=jnp.float32)
    params["lin_table"] = 0.1 * jax.random.normal(
        next(k), (n_feat, 1), dtype=jnp.float32)
    params["lin_bias"] = 0.01 * jax.random.normal(next(k), (1,), dtype=jnp.float32)

    mlp_layers = []
    in_dim = embed_out_dim
    for h in mlp_dims:
        W = (1.0 / jnp.sqrt(in_dim)) * jax.random.normal(
            next(k), (in_dim, h), dtype=jnp.float32)
        b = 0.01 * jax.random.normal(next(k), (h,), dtype=jnp.float32)
        gamma = jnp.ones((h,), dtype=jnp.float32)
        beta = jnp.zeros((h,), dtype=jnp.float32)
        rmean = jnp.zeros((h,), dtype=jnp.float32)
        rvar = jnp.ones((h,), dtype=jnp.float32)
        mlp_layers.append((W, b, gamma, beta, rmean, rvar))
        in_dim = h
    params["mlp_layers"] = mlp_layers

    params["w_out"] = (1.0 / jnp.sqrt(in_dim)) * jax.random.normal(
        next(k), (in_dim, 1), dtype=jnp.float32)
    params["b_out"] = 0.01 * jax.random.normal(next(k), (1,), dtype=jnp.float32)
    return params


def dfa_deepfm_forward(x_idx, params):
    """x_idx: int32 (B, F) per-field categorical indices -> sigmoid scores (B,)."""
    B, F = x_idx.shape
    E = params["emb_table"].shape[1]
    fe = F * E

    idx = x_idx + params["offsets"][None, :]                       # (B, F)
    # Embedding gathers are data-dependent glue, done in plain JAX.
    # TODO(synk): for very large B, move this gather in-kernel (scalar-prefetch + DMA
    # from an HBM-resident table) to avoid the extra HBM round trip of jnp.take.
    embed_flat = jnp.take(params["emb_table"], idx, axis=0).reshape(B, fe)
    lin = jnp.sum(jnp.take(params["lin_table"][:, 0], idx, axis=0), axis=1)
    lin = lin + params["lin_bias"][0] + params["b_out"][0]         # fold both biases
    x_block = jnp.concatenate([embed_flat, lin[:, None]], axis=1)  # (B, fe+1) f32

    # Fold eval-mode BatchNorm into the Linear weights; bf16 weights for the MXU.
    eps = 1e-5
    fused = []
    for (W, b, gamma, beta, rmean, rvar) in params["mlp_layers"]:
        scale = gamma / jnp.sqrt(rvar + eps)
        shift = beta - rmean * scale
        Wf = (W * scale[None, :]).astype(jnp.bfloat16)
        bf = (b * scale + shift)[None, :].astype(jnp.float32)
        fused.append((Wf, bf))
    w_out_row = params["w_out"][:, 0][None, :].astype(jnp.float32)  # (1, H_last)

    # Batch tiling: one tile for small B; 512-row tiles (lane-dense stores) otherwise.
    b8 = _round_up(B, 8)
    if b8 <= 512:
        tb, b_pad = b8, b8
    else:
        tb = 512
        b_pad = _round_up(B, tb)
    if b_pad > B:
        x_block = jnp.pad(x_block, ((0, b_pad - B), (0, 0)))

    n_layers = len(fused)
    kernel = _make_kernel(n_layers, F, E)

    inputs = [x_block]
    in_specs = [pl.BlockSpec((tb, fe + 1), lambda i: (i, 0))]
    for (Wf, bf) in fused:
        inputs += [Wf, bf]
        in_specs += [pl.BlockSpec(Wf.shape, lambda i: (0, 0)),      # resident weights
                     pl.BlockSpec(bf.shape, lambda i: (0, 0))]
    inputs.append(w_out_row)
    in_specs.append(pl.BlockSpec(w_out_row.shape, lambda i: (0, 0)))

    out = pl.pallas_call(
        kernel,
        out_shape=jax.ShapeDtypeStruct((1, b_pad), jnp.float32),
        grid=(b_pad // tb,),
        in_specs=in_specs,
        out_specs=pl.BlockSpec((1, tb), lambda i: (0, i)),
        compiler_params=pltpu.CompilerParams(
            dimension_semantics=("parallel",)),
    )(*inputs)
    return out[0, :B]                                              # (B,)


if __name__ == "__main__":
    field_dims = (7, 11, 13, 17)      # 4 fields
    embed_dim = 16
    mlp_dims = (32, 32)
    dropout = 0.2                      # identity in the (eval) forward pass
    batch = 8

    key = jax.random.PRNGKey(0)
    pkey, xkey = jax.random.split(key)
    params = init_params(pkey, field_dims, embed_dim, mlp_dims)

    xkeys = jax.random.split(xkey, len(field_dims))
    cols = [jax.random.randint(xkeys[i], (batch, 1), 0, field_dims[i], dtype=jnp.int32)
            for i in range(len(field_dims))]
    x_idx = jnp.concatenate(cols, axis=1)                          # (B, F) int32

    out = dfa_deepfm_forward(x_idx, params)
    jax.block_until_ready(out)
    assert out.shape == (batch,)
    assert bool(jnp.all(jnp.isfinite(out)))
    assert bool(jnp.all((out > 0.0) & (out < 1.0)))
    print("KERNEL_OK")
</pallas_src>

<mosaic_0001>
module attributes {stable_mosaic.version = 11 : i64} {
  func.func @kernel(%arg0: i32, %arg1: memref<8x65xf32, #tpu.memory_space<vmem>>, %arg2: memref<64x32xbf16, #tpu.memory_space<vmem>>, %arg3: memref<1x32xf32, #tpu.memory_space<vmem>>, %arg4: memref<32x32xbf16, #tpu.memory_space<vmem>>, %arg5: memref<1x32xf32, #tpu.memory_space<vmem>>, %arg6: memref<1x32xf32, #tpu.memory_space<vmem>>, %arg7: memref<1x8xf32, #tpu.memory_space<vmem>>) attributes {dimension_semantics = [#tpu.dimension_semantics<parallel>], iteration_bounds = array<i64: 1>, scalar_prefetch = 0 : i64, scratch_operands = 0 : i64, tpu.core_type = #tpu.core_type<tc>, window_params = [{transform_indices = @transform_0, window_bounds = array<i64: 8, 65>}, {pipeline_mode = #tpu.pipeline_mode<synchronous>, transform_indices = @transform_1, window_bounds = array<i64: 64, 32>}, {pipeline_mode = #tpu.pipeline_mode<synchronous>, transform_indices = @transform_2, window_bounds = array<i64: 1, 32>}, {pipeline_mode = #tpu.pipeline_mode<synchronous>, transform_indices = @transform_3, window_bounds = array<i64: 32, 32>}, {pipeline_mode = #tpu.pipeline_mode<synchronous>, transform_indices = @transform_4, window_bounds = array<i64: 1, 32>}, {pipeline_mode = #tpu.pipeline_mode<synchronous>, transform_indices = @transform_5, window_bounds = array<i64: 1, 32>}, {transform_indices = @transform_6, window_bounds = array<i64: 1, 8>}]} {
    %c0 = arith.constant 0 : index
    %c0_0 = arith.constant 0 : index
    %0 = vector.load %arg1[%c0, %c0_0] : memref<8x65xf32, #tpu.memory_space<vmem>>, vector<8x65xf32>
    %1 = vector.extract_strided_slice %0 {offsets = [0, 0], sizes = [8, 64], strides = [1, 1]} : vector<8x65xf32> to vector<8x64xf32>
    %2 = vector.extract_strided_slice %0 {offsets = [0, 64], sizes = [8, 1], strides = [1, 1]} : vector<8x65xf32> to vector<8x1xf32>
    %3 = vector.shape_cast %2 : vector<8x1xf32> to vector<8xf32>
    %4 = vector.extract_strided_slice %1 {offsets = [0, 0], sizes = [8, 16], strides = [1, 1]} : vector<8x64xf32> to vector<8x16xf32>
    %5 = vector.extract_strided_slice %1 {offsets = [0, 16], sizes = [8, 16], strides = [1, 1]} : vector<8x64xf32> to vector<8x16xf32>
    %6 = arith.addf %4, %5 : vector<8x16xf32>
    %7 = vector.extract_strided_slice %1 {offsets = [0, 32], sizes = [8, 16], strides = [1, 1]} : vector<8x64xf32> to vector<8x16xf32>
    %8 = arith.addf %6, %7 : vector<8x16xf32>
    %9 = vector.extract_strided_slice %1 {offsets = [0, 48], sizes = [8, 16], strides = [1, 1]} : vector<8x64xf32> to vector<8x16xf32>
    %10 = arith.addf %8, %9 : vector<8x16xf32>
    %11 = arith.mulf %10, %10 : vector<8x16xf32>
    %cst = arith.constant dense<0.000000e+00> : vector<8xf32>
    %12 = vector.multi_reduction <add>, %11, %cst [1] : vector<8x16xf32> to vector<8xf32>
    %13 = arith.mulf %1, %1 : vector<8x64xf32>
    %cst_1 = arith.constant dense<0.000000e+00> : vector<8xf32>
    %14 = vector.multi_reduction <add>, %13, %cst_1 [1] : vector<8x64xf32> to vector<8xf32>
    %15 = arith.subf %12, %14 : vector<8xf32>
    %cst_2 = arith.constant 5.000000e-01 : f32
    %16 = vector.broadcast %cst_2 : f32 to vector<8xf32>
    %17 = arith.mulf %16, %15 : vector<8xf32>
    %18 = arith.truncf %1 : vector<8x64xf32> to vector<8x64xbf16>
    %c0_3 = arith.constant 0 : index
    %c0_4 = arith.constant 0 : index
    %19 = vector.load %arg2[%c0_3, %c0_4] : memref<64x32xbf16, #tpu.memory_space<vmem>>, vector<64x32xbf16>
    %cst_5 = arith.constant dense<0.000000e+00> : vector<8x32xf32>
    %20 = tpu.matmul %18, %19, %cst_5 {dimension_numbers = #tpu.dot_dimension_numbers<[1], [0], [0], [1], [0, 0, 1, 1], [], []>} : vector<8x64xbf16>, vector<64x32xbf16>, vector<8x32xf32> -> vector<8x32xf32>
    %c0_6 = arith.constant 0 : index
    %c0_7 = arith.constant 0 : index
    %21 = vector.load %arg3[%c0_6, %c0_7] : memref<1x32xf32, #tpu.memory_space<vmem>>, vector<1x32xf32>
    %22 = vector.broadcast %21 : vector<1x32xf32> to vector<8x32xf32>
    %23 = arith.addf %20, %22 : vector<8x32xf32>
    %cst_8 = arith.constant 0.000000e+00 : f32
    %24 = vector.broadcast %cst_8 : f32 to vector<8x32xf32>
    %25 = arith.maximumf %23, %24 : vector<8x32xf32>
    %26 = arith.truncf %25 : vector<8x32xf32> to vector<8x32xbf16>
    %c0_9 = arith.constant 0 : index
    %c0_10 = arith.constant 0 : index
    %27 = vector.load %arg4[%c0_9, %c0_10] : memref<32x32xbf16, #tpu.memory_space<vmem>>, vector<32x32xbf16>
    %cst_11 = arith.constant dense<0.000000e+00> : vector<8x32xf32>
    %28 = tpu.matmul %26, %27, %cst_11 {dimension_numbers = #tpu.dot_dimension_numbers<[1], [0], [0], [1], [0, 0, 1, 1], [], []>} : vector<8x32xbf16>, vector<32x32xbf16>, vector<8x32xf32> -> vector<8x32xf32>
    %c0_12 = arith.constant 0 : index
    %c0_13 = arith.constant 0 : index
    %29 = vector.load %arg5[%c0_12, %c0_13] : memref<1x32xf32, #tpu.memory_space<vmem>>, vector<1x32xf32>
    %30 = vector.broadcast %29 : vector<1x32xf32> to vector<8x32xf32>
    %31 = arith.addf %28, %30 : vector<8x32xf32>
    %cst_14 = arith.constant 0.000000e+00 : f32
    %32 = vector.broadcast %cst_14 : f32 to vector<8x32xf32>
    %33 = arith.maximumf %31, %32 : vector<8x32xf32>
    %c0_15 = arith.constant 0 : index
    %c0_16 = arith.constant 0 : index
    %34 = vector.load %arg6[%c0_15, %c0_16] : memref<1x32xf32, #tpu.memory_space<vmem>>, vector<1x32xf32>
    %35 = vector.broadcast %34 : vector<1x32xf32> to vector<8x32xf32>
    %36 = arith.mulf %33, %35 : vector<8x32xf32>
    %cst_17 = arith.constant dense<0.000000e+00> : vector<8xf32>
    %37 = vector.multi_reduction <add>, %36, %cst_17 [1] : vector<8x32xf32> to vector<8xf32>
    %38 = arith.addf %3, %17 : vector<8xf32>
    %39 = arith.addf %38, %37 : vector<8xf32>
    %40 = arith.negf %39 : vector<8xf32>
    %41 = math.exp %40 : vector<8xf32>
    %cst_18 = arith.constant 1.000000e+00 : f32
    %42 = vector.broadcast %cst_18 : f32 to vector<8xf32>
    %43 = arith.addf %42, %41 : vector<8xf32>
    %44 = arith.divf %42, %43 : vector<8xf32>
    %45 = vector.shape_cast %44 : vector<8xf32> to vector<1x8xf32>
    %c0_19 = arith.constant 0 : index
    %c0_20 = arith.constant 0 : index
    %46 = vector.load %arg7[%c0_19, %c0_20] : memref<1x8xf32, #tpu.memory_space<vmem>>, vector<1x8xf32>
    tpu.vector_store %arg7[%c0_19, %c0_20], %45 {strides = array<i32>} : memref<1x8xf32, #tpu.memory_space<vmem>>, vector<1x8xf32>,
    return
  }
  func.func @transform_0(%arg0: i32) -> (i32, i32) {
    %c0_i32 = arith.constant 0 : i32
    %c0_i32_0 = arith.constant 0 : i32
    return %arg0, %c0_i32 : i32, i32
  }
  func.func @transform_1(%arg0: i32) -> (i32, i32) {
    %c0_i32 = arith.constant 0 : i32
    %c0_i32_0 = arith.constant 0 : i32
    %c0_i32_1 = arith.constant 0 : i32
    return %c0_i32, %c0_i32_0 : i32, i32
  }
  func.func @transform_2(%arg0: i32) -> (i32, i32) {
    %c0_i32 = arith.constant 0 : i32
    %c0_i32_0 = arith.constant 0 : i32
    %c0_i32_1 = arith.constant 0 : i32
    return %c0_i32, %c0_i32_0 : i32, i32
  }
  func.func @transform_3(%arg0: i32) -> (i32, i32) {
    %c0_i32 = arith.constant 0 : i32
    %c0_i32_0 = arith.constant 0 : i32
    %c0_i32_1 = arith.constant 0 : i32
    return %c0_i32, %c0_i32_0 : i32, i32
  }
  func.func @transform_4(%arg0: i32) -> (i32, i32) {
    %c0_i32 = arith.constant 0 : i32
    %c0_i32_0 = arith.constant 0 : i32
    %c0_i32_1 = arith.constant 0 : i32
    return %c0_i32, %c0_i32_0 : i32, i32
  }
  func.func @transform_5(%arg0: i32) -> (i32, i32) {
    %c0_i32 = arith.constant 0 : i32
    %c0_i32_0 = arith.constant 0 : i32
    %c0_i32_1 = arith.constant 0 : i32
    return %c0_i32, %c0_i32_0 : i32, i32
  }
  func.func @transform_6(%arg0: i32) -> (i32, i32) {
    %c0_i32 = arith.constant 0 : i32
    %c0_i32_0 = arith.constant 0 : i32
    return %c0_i32, %arg0 : i32, i32
  }
}

</mosaic_0001>

<bundles_post_ra>
// kernel: tpu_custom_call.1
= control target key start
LH: loop header
LB: loop body
LE: loop exit
PB: predicated region body
PF: predicated region fallthrough
CT: control target
= control target key end

     0   :  { %v333_v1 = vmov 0.0   ;;  %vm334_vm0 = vmmov 0   ;;  %s421_s0 = inlined_call_operand.vmem [shape: f32[8,65], index: 0, kind: input, shape index: {}]   ;;  %s422_s1 = inlined_call_operand.vmem [shape: bf16[64,32], index: 1, kind: input, shape index: {}]   ;;  %s423_s2 = inlined_call_operand.vmem [shape: f32[1,32], index: 2, kind: input, shape index: {}]   ;;  %s424_s3 = inlined_call_operand.vmem [shape: bf16[32,32], index: 3, kind: input, shape index: {}]   ;;  %s425_s4 = inlined_call_operand.vmem [shape: f32[1,32], index: 4, kind: input, shape index: {}]   ;;  %s426_s5 = inlined_call_operand.vmem [shape: f32[1,32], index: 5, kind: input, shape index: {}]   ;;  %s427_s6 = inlined_call_operand.hbm [shape: f32[1,8], index: 6, kind: output, shape index: {}]  }
   0x1   :  { %v299_v0 = vld [vmem:[%s422_s1] sm:$0xff]   ;;  %270 = vmatprep.subr.bf16.mxu0 %v333_v1  ;;  %282 = vmatprep.subr.bf16.mxu1 %v333_v1  ;;  %v300_v2 = vld [vmem:[%s422_s1 + $0x8] sm:$0xff]   ;;  %v301_v3 = vld [vmem:[%s422_s1 + $0x10] sm:$0xff]  }
   0x2   :  { %271 = vmatpush3.bf16.msra.mxu0 %v299_v0  ;;  %278 = vmatprep.mubr.msk.bf16.mxu0 %vm334_vm0, %v333_v1 }
   0x3   :  { %272 = vmatprep.subr.bf16.mxu0 %v333_v1  ;;  %286 = vmatprep.mubr.msk.bf16.mxu1 %vm334_vm0, %v333_v1 }
   0x6   :  { %273 = vmatpush3.bf16.msra.mxu0 %v300_v2 }
   0x7   :  { %11 = vsyncpa [#allocation3], 0  ;;  %274 = vmatprep.subr.bf16.mxu0 %v333_v1  ;;  %v302_v4 = vld [vmem:[%s422_s1 + $0x18] sm:$0xff]   ;;  %v25_v5 = vld [vmem:[%s421_s0] sm:$0xff]  ;;  %vm45_vm1 = vcmask 523264   ;;  %s335_s1 = smov 112   ;;  %v227_v49 = vlaneseq }
   0x8   :  { %v51_v6 = vpack.c.bf16 %v25_v5, %v25_v5  ;;  %v303_v7 = vld [vmem:[%s424_s3] sm:$0xff]   ;;  %v304_v8 = vld [vmem:[%s424_s3 + $0x8] sm:$0xff]   ;;  %27 = vrot.lane.b32.xlu0 %v25_v5, %s335_s1  ;;  %s336_s0 = smov 80   ;;  %s337_s11 = smov 96   ;;  %vm40_vm2 = vcmask 130048   ;;  %vm159_vm3 = vcmask 261120   ;;  %v44_v25 = vmul.f32 %v25_v5, %v25_v5 }
   0x9   :  { %283 = vmatpush3.bf16.msra.mxu1 %v303_v7  ;;  %35 = vrot.lane.b32.xlu1 %v25_v5, %s336_s0  ;;  %v250_v11 = vld [vmem:[%s423_s2] ss:$0 sm:$0xff]  ;;  %v338_v37 = vmov 64   ;;  %v228_v50 = vand.u32 127, %v227_v49  ;;  %v230_v51 = vshrl.u32 %v227_v49, 7  ;;  %vm234_vm4 = vcmask 57344  }
   0xa   :  { %275 = vmatpush3.bf16.msra.mxu0 %v301_v3  ;;  %284 = vmatprep.subr.bf16.mxu1 %v333_v1  ;;  %v46_v26 = vsel %vm45_vm1, %v44_v25, 0.0  ;;  %v256_v27 = vld [vmem:[%s425_s4] ss:$0 sm:$0xff]  ;;  %s339_s4 = smov [#allocation2]  }
   0xb   :  { %276 = vmatprep.subr.bf16.mxu0 %v333_v1  ;;  %v260_v32 = vld [vmem:[%s426_s5] ss:$0 sm:$0xff]  ;;  %297 = vset.pattern.permute.xlu1 %v338_v37  ;;  %v231_v52 = vsub.s32 %v228_v50, %v230_v51  ;;  %s242_s5 = sshll.u32 %s339_s4, 4  ;;  %s243_s5 = int_to_ptr.vmem [resolvable:$true] %s242_s5 }
   0xc   :  { %31 = vrot.lane.b32.xlu0 %v25_v5, %s337_s11  ;;  %s309_s16 = scalar_lea.vmem %s243_s5, 16  ;;  %s313_s17 = scalar_lea.vmem %s243_s5, 32 }
   0xd   :  { %285 = vmatpush3.bf16.msra.mxu1 %v304_v8  ;;  %298 = vset.pattern.permute.xlu0 %v338_v37  ;;  %p310_p0 = scmp.ne.s32.totalorder %s243_s5, %s309_s16  ;;  %p314_p1 = scmp.lt.s32.totalorder %s243_s5, %s243_s5 }
   0xe   :  { %277 = vmatpush3.bf16.msra.mxu0 %v302_v4  ;;  %p315_p2 = scmp.lt.s32.totalorder %s313_s17, %s309_s16 }
  0x10   :  { %p316_p3 = por %p315_p2, %p314_p1 }
  0x11   :  { %279 = vmatmul.mubr.msk.bf16.vlgmr.msra.gmra.mrb[0].mxu0 %vm45_vm1, %v51_v6 }
  0x12   :  { %p317_p4 = pnand %p316_p3, %p310_p0 }
  0x2b   :  { %47 = vadd.xlane.f32.xlu0 %v46_v26 }
  0x7a   :  { %v28_v9 = vpop.permute.xlu0 %27 }
  0x7b   :  { %v30_v10 = vadd.f32 %v28_v9, %v25_v5  ;;  %v36_v13 = vpop.permute.xlu1 %35 }
  0x7e   :  { %v32_v12 = vpop.permute.xlu0 %31 }
  0x7f   :  { %v34_v14 = vadd.f32 %v32_v12, %v30_v10 }
  0x81   :  { %v38_v18 = vadd.f32 %v36_v13, %v34_v14 }
  0x83   :  { %v39_v22 = vmul.f32 %v38_v18, %v38_v18 }
  0x85   :  { %v41_v24 = vsel %vm40_vm2, %v39_v22, 0.0 }
  0x86   :  { %42 = vadd.xlane.f32.xlu1 %v41_v24 }
  0xb8   :  { %v48_v39 = vpop.xlane.xlu0 %47 }
  0xe4   :  { %v128_v15 = vpop.f32.mrb[0].mxu0 }
  0xe5   :  { %v129_v16 = vadd.f32 %v250_v11, %v128_v15  ;;  %v280_v17 = vpop.f32.mrb[1].mxu0 }
  0xe6   :  { %v131_v19 = vpop.f32.mrb[2].mxu0 }
  0xe7   :  { %v134_v20 = vmax.f32 %v129_v16, 0.0  ;;  %v281_v21 = vpop.f32.mrb[3].mxu0 }
  0xe9   :  { %v135_v23 = vpack.c.bf16 %v134_v20, %v134_v20 }
  0xeb   :  { %287 = vmatmul.mubr.msk.bf16.vlgmr.msra.gmra.mrb[0].mxu1 %vm159_vm3, %v135_v23 }
 0x113   :  { %v43_v38 = vpop.xlane.xlu1 %42 }
 0x114   :  { %v49_v40 = vsub.f32 %v43_v38, %v48_v39 }
 0x116   :  { %v50_v41 = vmul.f32 0.5, %v49_v40 }
 0x118   :  { %v215_v42 = vadd.f32 %v50_v41, %v25_v5 }
 0x1be   :  { %v197_v28 = vpop.f32.mrb[0].mxu1 }
 0x1bf   :  { %v198_v29 = vadd.f32 %v256_v27, %v197_v28  ;;  %v288_v30 = vpop.f32.mrb[1].mxu1 }
 0x1c0   :  { %v200_v31 = vpop.f32.mrb[2].mxu1 }
 0x1c1   :  { %v203_v33 = vmax.f32 %v198_v29, 0.0  ;;  %v289_v34 = vpop.f32.mrb[3].mxu1 }
 0x1c3   :  { %v211_v35 = vmul.f32 %v260_v32, %v203_v33 }
 0x1c5   :  { %v212_v36 = vsel %vm159_vm3, %v211_v35, 0.0 }
 0x1c6   :  { %213 = vadd.xlane.f32.xlu0 %v212_v36 }
 0x253   :  { %v214_v43 = vpop.xlane.xlu0 %213 }
 0x254   :  { %v216_v44 = vadd.f32 %v215_v42, %v214_v43 }
 0x256   :  { %v261_v45 = vmul.f32 -1.442695, %v216_v44 }
 0x258   :  { %305 = vpow2.f32 %v261_v45 }
 0x262   :  { %v306_v46 = vpop.eup %305 }
 0x263   :  { %v220_v47 = vadd.f32 1.0, %v306_v46 }
 0x265   :  { %307 = vrcp.f32 %v220_v47 }
 0x26f   :  { %v308_v48 = vpop.eup %307 }
 0x270   :  { %225 = vperm.xlu1 %297, %v308_v48  }
 0x2ef   :  { %v226_v53 = vpop.permute.xlu1 %225 }
 0x2f0   :  { %v232_v54 = vrot.slane %v226_v53, %v231_v52 }
 0x2f2   :  { %235 = vst.msk [vmem:[#allocation2] sm:$0x1] %vm234_vm4, %v232_v54 }
 0x2f3   :  { %320 = shalt.err (!%p317_p4)
}
 0x2f4   :  { %s321_s20 = scalar_lea.hbm %s427_s6, 16 }
 0x2f5   :  { %p322_p5 = scmp.ne.s32.totalorder %s427_s6, %s321_s20  ;;  %p325_p6 = scmp.lt.u32.totalorder %s321_s20, %s427_s6 }
 0x2f7   :  { %p327_p7 = pnand %p325_p6, %p322_p5 }
 0x2f9   :  { %330 = shalt.err (!%p327_p7)
}
 0x2fa   :  { %245 = dma.vmem_to_hbm [thread:$0]  %s243_s5, 16, %s427_s6, [#allocation3]  }
 0x2fb   :  { %331 = dma.done.wait [#allocation3], 16  }
 0x2fc   :  { %332 = vsyncadd [#allocation3], 4294967280 }
 0x2fd   :  { %249 = vsyncpa [#allocation3], 1 }

</bundles_post_ra>
